<compile_context>
chip_gen: v7x
topology: tpu7x:2x2x1
jax: 0.10.0
libtpu: 0.0.40
codegen_flags: <defaults>
</compile_context>

<pallas_src>
import jax
import jax.numpy as jnp
from jax.experimental import pallas as pl
from jax.experimental.pallas import tpu as pltpu


def _scale_kernel(w_ref, x_ref, o_ref):
    # w_ref: (1, 1) scalar weight in SMEM; x_ref/o_ref: (tm, W) VMEM tiles.
    # Mixed-dtype multiply promotes in-kernel; cast to the output dtype on store.
    o_ref[...] = (x_ref[...] * w_ref[0, 0]).astype(o_ref.dtype)


def _promoted_dtype(x_dtype, w_dtype):
    # PyTorch 0-dim ("scalar tensor") promotion: the scalar weight only bumps
    # the result dtype when it is in a strictly higher category than the input
    # (e.g. int input * float weight -> float); otherwise the input dtype wins.
    x_float = jnp.issubdtype(x_dtype, jnp.floating)
    w_float = jnp.issubdtype(w_dtype, jnp.floating)
    if w_float and not x_float:
        return jnp.result_type(x_dtype, w_dtype)
    return jnp.dtype(x_dtype)


def _block_target_bytes():
    """Per-grid-step byte budget (input + output combined), per TPU generation."""
    try:
        kind = jax.devices()[0].device_kind.lower()
    except Exception:  # pragma: no cover - CPU/interpret fallbacks
        kind = ""
    if "v7" in kind or "7x" in kind:
        return 12 << 20   # v7x: ~3.2 TB/s per TC -> big steps amortize ~0.35us overhead
    if "v6" in kind:
        return 6 << 20    # v6e: ~1.35 TB/s
    if "v5e" in kind or "v5 lite" in kind or "v5lite" in kind:
        return 3 << 20    # v5e: ~0.8 TB/s; scoped-VMEM default is only 16 MiB
    return 4 << 20        # unknown / v4 / v5p: conservative middle ground


def _pick_tm(rows, target_rows, sublane):
    """Largest sublane-aligned row tile <= target_rows, preferring an exact
    divisor of `rows` (searched down to ~half the target) so every writeback
    is a full unmasked vst. Falls back to a ragged (masked) last block."""
    aligned = max(sublane, (target_rows // sublane) * sublane)
    lo = max(sublane, aligned // 2)
    cand = aligned
    while cand >= lo:
        if rows % cand == 0:
            return cand
        cand -= sublane
    return aligned  # ragged last block; Pallas masks the partial store


def weight_layer(x: jax.Array, weight, *, donate_input: bool = False) -> jax.Array:
    """Equivalent of WeightLayer.forward: input * weight (scalar parameter)."""
    orig_shape = x.shape
    w = jnp.asarray(weight)
    out_dtype = _promoted_dtype(x.dtype, w.dtype)
    # Scalar lives in SMEM (32-bit scalar memory); compute dtype of the SMEM
    # copy is f32 for floating results, i32 for integer results.
    w_compute_dtype = (
        jnp.float32 if jnp.issubdtype(out_dtype, jnp.floating) else jnp.int32
    )
    w_c = w.astype(w_compute_dtype)

    n = x.size
    x_flat = jnp.ravel(x)

    # Aligned prefix handled by the kernel; the (<128 element) tail — if any —
    # is a plain XLA multiply.  No pad/slice copies (the op is purely
    # bandwidth-bound, an extra HBM pass would ~double its cost).
    main = (n // 128) * 128
    if main == 0:
        # Tiny input: a kernel launch is pure overhead.
        return (x_flat * w_c).astype(out_dtype).reshape(orig_shape)

    # Widest lane width W (multiple of 128) dividing the aligned prefix:
    # lane-dense, fully unmasked stores.
    W = 128
    for cand in (2048, 1024, 512, 256, 128):
        if main >= cand and main % cand == 0:
            W = cand
            break
    rows = main // W
    x2d = (x_flat[:main] if main < n else x_flat).reshape(rows, W)

    itemsize = jnp.dtype(x.dtype).itemsize
    out_itemsize = jnp.dtype(out_dtype).itemsize
    # Sublane packing for the input dtype (8 for f32, 16 for bf16, 32 for int8).
    sublane = max(8, 32 // itemsize)

    # Row budget from *total* (input + output) bytes per row, so dtype
    # promotion doesn't blow the VMEM estimate.
    row_bytes = W * (itemsize + out_itemsize)
    target_rows = max(1, _block_target_bytes() // row_bytes)

    if rows <= target_rows:
        if rows >= 2 * sublane:
            # Split into >= 2 parallel blocks so both v7x TensorCores stream.
            half = pl.cdiv(rows, 2)
            tm = ((half + sublane - 1) // sublane) * sublane
        else:
            tm = rows          # single block; full-dim block is always legal
    else:
        tm = _pick_tm(rows, target_rows, sublane)

    grid = (pl.cdiv(rows, tm),)

    # Scoped VMEM: double-buffered input + output blocks plus headroom,
    # floored at the v5e default (16 MiB) and capped under v7x physical (64 MiB).
    in_block = tm * W * itemsize
    out_block = tm * W * out_itemsize
    vmem_limit = int(min(max(2 * (in_block + out_block) + (8 << 20), 16 << 20), 48 << 20))

    extra_kwargs = {}
    if donate_input and jnp.dtype(out_dtype) == jnp.dtype(x.dtype):
        # In-place scale when the caller donates x: halves peak HBM footprint.
        extra_kwargs["input_output_aliases"] = {1: 0}

    out2d = pl.pallas_call(
        _scale_kernel,
        out_shape=jax.ShapeDtypeStruct((rows, W), out_dtype),
        grid_spec=pltpu.PrefetchScalarGridSpec(
            num_scalar_prefetch=0,
            grid=grid,
            in_specs=[
                pl.BlockSpec(memory_space=pltpu.SMEM),       # (1,1) scalar weight
                pl.BlockSpec((tm, W), lambda i: (i, 0)),     # input tile
            ],
            out_specs=pl.BlockSpec((tm, W), lambda i: (i, 0)),
        ),
        compiler_params=pltpu.CompilerParams(
            dimension_semantics=("parallel",),
            vmem_limit_bytes=vmem_limit,
        ),
        cost_estimate=pl.CostEstimate(
            flops=main,
            transcendentals=0,
            bytes_accessed=main * (itemsize + out_itemsize),
        ),
        **extra_kwargs,
    )(w_c.reshape(1, 1), x2d)

    out_flat = out2d.reshape(-1)
    if main < n:
        tail_out = (x_flat[main:] * w_c).astype(out_dtype)   # <128 elements, XLA
        out_flat = jnp.concatenate([out_flat, tail_out])
    return out_flat.reshape(orig_shape)


if __name__ == "__main__":
    key = jax.random.PRNGKey(0)
    # Small NCHW-like input, consistent with a conv-style pipeline.
    x = jax.random.normal(key, (2, 4, 16, 16), dtype=jnp.float32)

    # WeightLayer(init_value=1): scalar weight of 1.
    out = jax.block_until_ready(weight_layer(x, 1.0))
    assert out.shape == x.shape and out.dtype == x.dtype
    assert jnp.allclose(out, x, atol=0.0, rtol=0.0)

    # Non-trivial weight value.
    out2 = jax.block_until_ready(weight_layer(x, jnp.float32(2.5)))
    assert jnp.allclose(out2, x * 2.5, atol=1e-6, rtol=1e-6)

    # Larger slab to exercise the multi-block (>=2 parallel tiles) path.
    x3 = jax.random.normal(jax.random.PRNGKey(1), (4, 8, 32, 32), dtype=jnp.float32)
    out3 = jax.block_until_ready(weight_layer(x3, jnp.float32(-0.5)))
    assert out3.shape == x3.shape and out3.dtype == x3.dtype
    assert jnp.allclose(out3, x3 * -0.5, atol=1e-6, rtol=1e-6)

    # Flat size not divisible by 128: aligned-prefix kernel + plain-XLA tail.
    x4 = jax.random.normal(jax.random.PRNGKey(2), (3, 100), dtype=jnp.float32)
    out4 = jax.block_until_ready(weight_layer(x4, jnp.float32(3.0)))
    assert out4.shape == x4.shape and out4.dtype == x4.dtype
    assert jnp.allclose(out4, x4 * 3.0, atol=1e-6, rtol=1e-6)

    # bf16 input with f32 scalar weight (multiply in f32, single round to bf16).
    x5 = jax.random.normal(jax.random.PRNGKey(3), (2, 4, 16, 16)).astype(jnp.bfloat16)
    out5 = jax.block_until_ready(weight_layer(x5, jnp.float32(2.0)))
    assert out5.shape == x5.shape and out5.dtype == jnp.bfloat16
    assert jnp.allclose(out5.astype(jnp.float32), x5.astype(jnp.float32) * 2.0,
                        atol=1e-2, rtol=1e-2)

    print("KERNEL_OK")
</pallas_src>

<mosaic_0001>
module attributes {stable_mosaic.version = 11 : i64} {
  func.func @_scale_kernel(%arg0: i32, %arg1: memref<1x1xf32, #tpu.memory_space<smem>>, %arg2: memref<1x2048xf32, #tpu.memory_space<vmem>>, %arg3: memref<1x2048xf32, #tpu.memory_space<vmem>>) attributes {dimension_semantics = [#tpu.dimension_semantics<parallel>], iteration_bounds = array<i64: 1>, scalar_prefetch = 0 : i64, scratch_operands = 0 : i64, tpu.core_type = #tpu.core_type<tc>, window_params = [{transform_indices = @transform_0, window_bounds = array<i64: 1, 1>}, {transform_indices = @transform_1, window_bounds = array<i64: 1, 2048>}, {transform_indices = @transform_2, window_bounds = array<i64: 1, 2048>}]} {
    %c0 = arith.constant 0 : index
    %c0_0 = arith.constant 0 : index
    %0 = vector.load %arg2[%c0, %c0_0] : memref<1x2048xf32, #tpu.memory_space<vmem>>, vector<1x2048xf32>
    %c0_1 = arith.constant 0 : index
    %c0_2 = arith.constant 0 : index
    %1 = memref.load %arg1[%c0_1, %c0_2] : memref<1x1xf32, #tpu.memory_space<smem>>
    %2 = vector.broadcast %1 : f32 to vector<1x2048xf32>
    %3 = arith.mulf %0, %2 : vector<1x2048xf32>
    %c0_3 = arith.constant 0 : index
    %c0_4 = arith.constant 0 : index
    %4 = vector.load %arg3[%c0_3, %c0_4] : memref<1x2048xf32, #tpu.memory_space<vmem>>, vector<1x2048xf32>
    tpu.vector_store %arg3[%c0_3, %c0_4], %3 {strides = array<i32>} : memref<1x2048xf32, #tpu.memory_space<vmem>>, vector<1x2048xf32>,
    return
  }
  func.func @transform_0(%arg0: i32) -> (i32, i32) {
    %c0_i32 = arith.constant 0 : i32
    %c0_i32_0 = arith.constant 0 : i32
    %c0_i32_1 = arith.constant 0 : i32
    return %c0_i32, %c0_i32_0 : i32, i32
  }
  func.func @transform_1(%arg0: i32) -> (i32, i32) {
    %c0_i32 = arith.constant 0 : i32
    %c0_i32_0 = arith.constant 0 : i32
    return %arg0, %c0_i32 : i32, i32
  }
  func.func @transform_2(%arg0: i32) -> (i32, i32) {
    %c0_i32 = arith.constant 0 : i32
    %c0_i32_0 = arith.constant 0 : i32
    return %arg0, %c0_i32 : i32, i32
  }
}

</mosaic_0001>

<bundles_post_ra>
// kernel: tpu_custom_call.1
= control target key start
LH: loop header
LB: loop body
LE: loop exit
PB: predicated region body
PF: predicated region fallthrough
CT: control target
= control target key end

     0   :  { %8 = vsyncpa [#allocation4], 0  ;;  %s142_s0 = inlined_call_operand.<no memory space> [shape: f32[1,1], index: 0, kind: input, shape index: {}]   ;;  %s143_s1 = inlined_call_operand.hbm [shape: f32[1,2048], index: 1, kind: input, shape index: {}]   ;;  %s144_s2 = inlined_call_operand.hbm [shape: f32[1,2048], index: 2, kind: output, shape index: {}]  }
   0x1   :  { %9 = vsyncpa [#allocation5], 0  ;;  %s98_s9 = smov [#allocation3]   ;;  %s50_s13 = scalar_lea.hbm %s143_s1, 256 }
   0x2   :  { %s18_s10 = sshll.u32 %s98_s9, 4  ;;  %p51_p0 = scmp.ne.s32.totalorder %s143_s1, %s50_s13  ;;  %s19_s10 = int_to_ptr.vmem [resolvable:$true] %s18_s10 }
   0x3   :  { %p54_p1 = scmp.lt.u32.totalorder %s50_s13, %s143_s1 }
   0x5   :  { %p56_p2 = pnand %p54_p1, %p51_p0 }
   0x7   :  { %59 = shalt.err (!%p56_p2)
}
   0x8   :  { %s60_s18 = scalar_lea.vmem %s19_s10, 256  ;;  %p65_p4 = scmp.lt.s32.totalorder %s19_s10, %s19_s10 }
   0x9   :  { %p61_p3 = scmp.ne.s32.totalorder %s19_s10, %s60_s18  ;;  %p66_p5 = scmp.lt.s32.totalorder %s60_s18, %s60_s18 }
   0xb   :  { %p67_p6 = por %p66_p5, %p65_p4 }
   0xd   :  { %p68_p7 = pnand %p67_p6, %p61_p3 }
   0xf   :  { %71 = shalt.err (!%p68_p7)
}
  0x10   :  { %21 = dma.hbm_to_vmem [thread:$0]  %s143_s1, 256, %s19_s10, [#allocation4]  }
  0x11   :  { %94 = dma.done.wait [#allocation4], 256  }
  0x12   :  { %95 = vsyncadd [#allocation4], 4294967040  ;;  %v28_v0 = vstv %s142_s0  ;;  %s99_s23 = smov [#allocation6]   ;;  %v25_v1 = vld [vmem:[#allocation3] sm:$0xff]  ;;  %v26_v2 = vld [vmem:[#allocation3 + $0x8] sm:$0xff] }
  0x13   :  { %s39_s24 = sshll.u32 %s99_s23, 4  ;;  %v29_v3 = vmul.f32 %v28_v0, %v25_v1  ;;  %v30_v4 = vmul.f32 %v28_v0, %v26_v2  ;;  %s40_s24 = int_to_ptr.vmem [resolvable:$true] %s39_s24 }
  0x14   :  { %s72_s25 = scalar_lea.vmem %s40_s24, 256  ;;  %p77_p9 = scmp.lt.s32.totalorder %s40_s24, %s40_s24 }
  0x15   :  { %31 = vst [vmem:[#allocation6] sm:$0xff] %v29_v3  ;;  %32 = vst [vmem:[#allocation6 + $0x8] sm:$0xff] %v30_v4  ;;  %p73_p8 = scmp.ne.s32.totalorder %s40_s24, %s72_s25  ;;  %p78_p10 = scmp.lt.s32.totalorder %s72_s25, %s72_s25 }
  0x17   :  { %p79_p11 = por %p78_p10, %p77_p9 }
  0x19   :  { %p80_p12 = pnand %p79_p11, %p73_p8 }
  0x1b   :  { %83 = shalt.err (!%p80_p12)
}
  0x1c   :  { %s84_s0 = scalar_lea.hbm %s144_s2, 256 }
  0x1d   :  { %p85_p13 = scmp.ne.s32.totalorder %s144_s2, %s84_s0  ;;  %p88_p0 = scmp.lt.u32.totalorder %s84_s0, %s144_s2 }
  0x1f   :  { %p90_p1 = pnand %p88_p0, %p85_p13 }
  0x21   :  { %93 = shalt.err (!%p90_p1)
}
  0x22   :  { %42 = dma.vmem_to_hbm [thread:$0]  %s40_s24, 256, %s144_s2, [#allocation5]  }
  0x23   :  { %96 = dma.done.wait [#allocation5], 256  }
  0x24   :  { %97 = vsyncadd [#allocation5], 4294967040 }
  0x25   :  { %46 = vsyncpa [#allocation4], 1 }
  0x26   :  { %47 = vsyncpa [#allocation5], 1 }

</bundles_post_ra>
